<compile_context>
chip_gen: v5e
topology: v5e:2x2
jax: 0.10.0
libtpu: 0.0.40
codegen_flags: <defaults>
</compile_context>

<pallas_src>
import jax
import jax.numpy as jnp
from jax import lax
from jax.experimental import pallas as pl
from jax.experimental.pallas import tpu as pltpu

S = 5    # sentence_length
B = 3    # batch_size
E = 8    # embedding_dim
EPS = 1e-05


def layernorm_kernel(x_ref, gamma_ref, beta_ref, o_ref):
    # x_ref: (S, B*E); gamma_ref/beta_ref: (1, B*E); o_ref: (S, B*E)
    x = x_ref[...].astype(jnp.float32)
    n = x.shape[-1]
    inv_n = jnp.float32(1.0 / n)
    # Single-axis (lane) reductions only.
    mean = jnp.sum(x, axis=-1, keepdims=True) * inv_n
    diff = x - mean
    var = jnp.sum(diff * diff, axis=-1, keepdims=True) * inv_n
    inv_std = lax.rsqrt(var + EPS)          # EUP; replaces sqrt + divide
    y = diff * inv_std
    out = gamma_ref[...] * y + beta_ref[...]
    o_ref[...] = out.astype(o_ref.dtype)


def layer_normalization(x, gamma, beta):
    """x: (S, B, E) f32; gamma, beta: (B, E) f32 -> (S, B, E) f32.

    LayerNorm over the last two dims (B, E), matching the PyTorch module.
    """
    s, b, e = x.shape
    be = b * e
    x2 = x.reshape(s, be)
    g2 = gamma.reshape(1, be)
    b2 = beta.reshape(1, be)

    out2 = pl.pallas_call(
        layernorm_kernel,
        out_shape=jax.ShapeDtypeStruct((s, be), x.dtype),
        grid=(1,),  # single invocation: whole tensor in one block
        in_specs=[
            pl.BlockSpec((s, be), lambda i: (0, 0)),
            pl.BlockSpec((1, be), lambda i: (0, 0)),
            pl.BlockSpec((1, be), lambda i: (0, 0)),
        ],
        out_specs=pl.BlockSpec((s, be), lambda i: (0, 0)),
        compiler_params=pltpu.CompilerParams(
            dimension_semantics=("arbitrary",)
        ),
    )(x2, g2, b2)
    return out2.reshape(s, b, e)


if __name__ == "__main__":
    key = jax.random.PRNGKey(0)
    inputs_1 = jax.random.normal(key, (S, B, E), dtype=jnp.float32)
    inputs_2 = inputs_1
    inputs = inputs_1 + inputs_2  # mirrors the reference script

    # Deterministic parameter init, same as nn.Parameter(torch.ones/zeros)
    gamma = jnp.ones((B, E), dtype=jnp.float32)
    beta = jnp.zeros((B, E), dtype=jnp.float32)

    out = layer_normalization(inputs, gamma, beta)
    out = jax.block_until_ready(out)

    # Pure-JAX reference check (two-pass LayerNorm, exactly as in the module)
    mean = jnp.mean(inputs, axis=(-2, -1), keepdims=True)
    var = jnp.mean((inputs - mean) ** 2, axis=(-2, -1), keepdims=True)
    ref = gamma * ((inputs - mean) / jnp.sqrt(var + EPS)) + beta
    assert jnp.allclose(out, ref, atol=1e-5, rtol=1e-5)

    print("KERNEL_OK")
</pallas_src>

<mosaic_0001>
module attributes {stable_mosaic.version = 11 : i64} {
  func.func @layernorm_kernel(%arg0: i32, %arg1: memref<5x24xf32, #tpu.memory_space<vmem>>, %arg2: memref<1x24xf32, #tpu.memory_space<vmem>>, %arg3: memref<1x24xf32, #tpu.memory_space<vmem>>, %arg4: memref<5x24xf32, #tpu.memory_space<vmem>>) attributes {dimension_semantics = [#tpu.dimension_semantics<arbitrary>], iteration_bounds = array<i64: 1>, scalar_prefetch = 0 : i64, scratch_operands = 0 : i64, tpu.core_type = #tpu.core_type<tc>, window_params = [{pipeline_mode = #tpu.pipeline_mode<synchronous>, transform_indices = @transform_0, window_bounds = array<i64: 5, 24>}, {pipeline_mode = #tpu.pipeline_mode<synchronous>, transform_indices = @transform_1, window_bounds = array<i64: 1, 24>}, {pipeline_mode = #tpu.pipeline_mode<synchronous>, transform_indices = @transform_2, window_bounds = array<i64: 1, 24>}, {pipeline_mode = #tpu.pipeline_mode<synchronous>, transform_indices = @transform_3, window_bounds = array<i64: 5, 24>}]} {
    %c0 = arith.constant 0 : index
    %c0_0 = arith.constant 0 : index
    %0 = vector.load %arg1[%c0, %c0_0] : memref<5x24xf32, #tpu.memory_space<vmem>>, vector<5x24xf32>
    %cst = arith.constant dense<0.000000e+00> : vector<5xf32>
    %1 = vector.multi_reduction <add>, %0, %cst [1] : vector<5x24xf32> to vector<5xf32>
    %2 = vector.shape_cast %1 : vector<5xf32> to vector<5x1xf32>
    %cst_1 = arith.constant 0.0416666679 : f32
    %3 = vector.broadcast %cst_1 : f32 to vector<5x1xf32>
    %4 = arith.mulf %2, %3 : vector<5x1xf32>
    %5 = vector.broadcast %4 : vector<5x1xf32> to vector<5x24xf32>
    %6 = arith.subf %0, %5 : vector<5x24xf32>
    %7 = arith.mulf %6, %6 : vector<5x24xf32>
    %cst_2 = arith.constant dense<0.000000e+00> : vector<5xf32>
    %8 = vector.multi_reduction <add>, %7, %cst_2 [1] : vector<5x24xf32> to vector<5xf32>
    %9 = vector.shape_cast %8 : vector<5xf32> to vector<5x1xf32>
    %cst_3 = arith.constant 0.0416666679 : f32
    %10 = vector.broadcast %cst_3 : f32 to vector<5x1xf32>
    %11 = arith.mulf %9, %10 : vector<5x1xf32>
    %cst_4 = arith.constant 9.99999974E-6 : f32
    %12 = vector.broadcast %cst_4 : f32 to vector<5x1xf32>
    %13 = arith.addf %11, %12 : vector<5x1xf32>
    %14 = math.rsqrt %13 : vector<5x1xf32>
    %15 = vector.broadcast %14 : vector<5x1xf32> to vector<5x24xf32>
    %16 = arith.mulf %6, %15 : vector<5x24xf32>
    %c0_5 = arith.constant 0 : index
    %c0_6 = arith.constant 0 : index
    %17 = vector.load %arg2[%c0_5, %c0_6] : memref<1x24xf32, #tpu.memory_space<vmem>>, vector<1x24xf32>
    %18 = vector.broadcast %17 : vector<1x24xf32> to vector<5x24xf32>
    %19 = arith.mulf %18, %16 : vector<5x24xf32>
    %c0_7 = arith.constant 0 : index
    %c0_8 = arith.constant 0 : index
    %20 = vector.load %arg3[%c0_7, %c0_8] : memref<1x24xf32, #tpu.memory_space<vmem>>, vector<1x24xf32>
    %21 = vector.broadcast %20 : vector<1x24xf32> to vector<5x24xf32>
    %22 = arith.addf %19, %21 : vector<5x24xf32>
    %c0_9 = arith.constant 0 : index
    %c0_10 = arith.constant 0 : index
    %23 = vector.load %arg4[%c0_9, %c0_10] : memref<5x24xf32, #tpu.memory_space<vmem>>, vector<5x24xf32>
    tpu.vector_store %arg4[%c0_9, %c0_10], %22 {strides = array<i32>} : memref<5x24xf32, #tpu.memory_space<vmem>>, vector<5x24xf32>,
    return
  }
  func.func @transform_0(%arg0: i32) -> (i32, i32) {
    %c0_i32 = arith.constant 0 : i32
    %c0_i32_0 = arith.constant 0 : i32
    %c0_i32_1 = arith.constant 0 : i32
    return %c0_i32, %c0_i32_0 : i32, i32
  }
  func.func @transform_1(%arg0: i32) -> (i32, i32) {
    %c0_i32 = arith.constant 0 : i32
    %c0_i32_0 = arith.constant 0 : i32
    %c0_i32_1 = arith.constant 0 : i32
    return %c0_i32, %c0_i32_0 : i32, i32
  }
  func.func @transform_2(%arg0: i32) -> (i32, i32) {
    %c0_i32 = arith.constant 0 : i32
    %c0_i32_0 = arith.constant 0 : i32
    %c0_i32_1 = arith.constant 0 : i32
    return %c0_i32, %c0_i32_0 : i32, i32
  }
  func.func @transform_3(%arg0: i32) -> (i32, i32) {
    %c0_i32 = arith.constant 0 : i32
    %c0_i32_0 = arith.constant 0 : i32
    %c0_i32_1 = arith.constant 0 : i32
    return %c0_i32, %c0_i32_0 : i32, i32
  }
}

</mosaic_0001>

<bundles_post_ra>
// kernel: tpu_custom_call.1
= control target key start
LH: loop header
LB: loop body
LE: loop exit
PB: predicated region body
PF: predicated region fallthrough
CT: control target
= control target key end

     0   :  { %8 = vsyncpa [#allocation3], 0  ;;  %s219_s0 = inlined_call_operand.hbm [shape: f32[5,24], index: 0, kind: input, shape index: {}]   ;;  %s220_s1 = inlined_call_operand.hbm [shape: f32[1,24], index: 1, kind: input, shape index: {}]   ;;  %s221_s2 = inlined_call_operand.vmem [shape: f32[1,24], index: 2, kind: input, shape index: {}]   ;;  %s222_s3 = inlined_call_operand.hbm [shape: f32[5,24], index: 3, kind: output, shape index: {}]  }
   0x1   :  { %9 = vsyncpa [#allocation6], 0 }
   0x2   :  { %10 = vsyncpa [#allocation4], 0  ;;  %s16_s14 = sshll.u32 %s219_s0, 4  ;;  %s181_s15 = smov [#allocation2]   ;;  %s17_s14 = int_to_ptr.hbm [resolvable:$true] %s16_s14 }
   0x3   :  { %s18_s16 = sshll.u32 %s181_s15, 4  ;;  %s27_s19 = sshll.u32 %s220_s1, 4  ;;  %s19_s16 = int_to_ptr.vmem [resolvable:$true] %s18_s16  ;;  %s28_s19 = int_to_ptr.hbm [resolvable:$true] %s27_s19 }
   0x4   :  { %21 = dma.hbm_to_vmem [thread:$0]  %s17_s14, 128, %s19_s16, [#allocation3]  }
   0x5   :  { %s182_s20 = smov [#allocation5]  }
   0x6   :  { %s29_s21 = sshll.u32 %s182_s20, 4  ;;  %s30_s21 = int_to_ptr.vmem [resolvable:$true] %s29_s21 }
   0x7   :  { %32 = dma.hbm_to_vmem [thread:$0]  %s28_s19, 16, %s30_s21, [#allocation6]  }
   0x8   :  { %175 = dma.done.wait [#allocation3], 128  }
   0x9   :  { %176 = vsyncadd [#allocation3], 4294967168 }
   0xa   :  { %177 = dma.done.wait [#allocation6], 16  }
   0xb   :  { %178 = vsyncadd [#allocation6], 4294967280  ;;  %vm44_vm0 = vcmask 192512   ;;  %v43_v0 = vld [vmem:[#allocation2] sm:$0x1f]  ;;  %s183_s22 = smov [#allocation7]  }
   0xc   :  { %v45_v1 = vsel %vm44_vm0, %v43_v0, 0.0  ;;  %v99_v16 = vld [vmem:[#allocation5] ss:$0 sm:$0xff]  ;;  %v100_v19 = vld [vmem:[%s221_s2] ss:$0 sm:$0xff]  ;;  %s83_s23 = sshll.u32 %s183_s22, 4  ;;  %s84_s23 = int_to_ptr.vmem [resolvable:$true] %s83_s23 }
   0xd   :  { %46 = vadd.xlane.f32.xlu0 %v45_v1  ;;  %s85_s26 = sshll.u32 %s222_s3, 4  ;;  %s86_s26 = int_to_ptr.hbm [resolvable:$true] %s85_s26 }
  0x80   :  { %v47_v2 = vpop.xlane.xlu0 %46 }
  0x81   :  { %v48_v3 = vmul.f32 0.041666668, %v47_v2 }
  0x83   :  { %v49_v4 = vsub.f32 %v43_v0, %v48_v3 }
  0x85   :  { %v50_v5 = vmul.f32 %v49_v4, %v49_v4 }
  0x87   :  { %v51_v6 = vsel %vm44_vm0, %v50_v5, 0.0 }
  0x88   :  { %52 = vadd.xlane.f32.xlu0 %v51_v6 }
  0xfb   :  { %v53_v7 = vpop.xlane.xlu0 %52 }
  0xfc   :  { %v54_v8 = vmul.f32 0.041666668, %v53_v7 }
  0xfe   :  { %v55_v9 = vadd.f32 1e-05, %v54_v8 }
 0x100   :  { %101 = vrsqrt.f32 %v55_v9  ;;  %vm62_vm2 = vweird.f32 %v55_v9 }
 0x106   :  { %v102_v10 = vpop.eup %101 }
 0x107   :  { %v57_v11 = vmul.f32 %v102_v10, %v55_v9  ;;  %vm63_vm1 = vweird.f32 %v102_v10 }
 0x108   :  { %vm64_vm3 = vmor %vm62_vm2, %vm63_vm1 }
 0x109   :  { %v58_v12 = vmul.f32 %v102_v10, %v57_v11 }
 0x10b   :  { %v59_v13 = vmul.f32 0.5, %v58_v12 }
 0x10d   :  { %v60_v14 = vsub.f32 1.5, %v59_v13 }
 0x10f   :  { %v61_v15 = vmul.f32 %v102_v10, %v60_v14 }
 0x111   :  { %v65_v17 = vsel %vm64_vm3, %v102_v10, %v61_v15 }
 0x112   :  { %v66_v18 = vmul.f32 %v65_v17, %v49_v4 }
 0x114   :  { %v71_v20 = vmul.f32 %v99_v16, %v66_v18 }
 0x116   :  { %v76_v21 = vadd.f32 %v100_v19, %v71_v20 }
 0x118   :  { %77 = vst.msk [vmem:[#allocation7] sm:$0x1f] %vm44_vm0, %v76_v21 }
 0x119   :  { %88 = dma.vmem_to_hbm [thread:$0]  %s84_s23, 128, %s86_s26, [#allocation4]  }
 0x11a   :  { %179 = dma.done.wait [#allocation4], 128  }
 0x11b   :  { %180 = vsyncadd [#allocation4], 4294967168 }
 0x11c   :  { %93 = vsyncpa [#allocation3], 1 }
 0x11d   :  { %94 = vsyncpa [#allocation6], 1 }
 0x11e   :  { %95 = vsyncpa [#allocation4], 1 }

</bundles_post_ra>
